<compile_context>
chip_gen: v7x
topology: tpu7x:2x2x1
jax: 0.10.0
libtpu: 0.0.40
codegen_flags: <defaults>
</compile_context>

<pallas_src>
import numpy as np
import jax
import jax.numpy as jnp
from jax.experimental import pallas as pl
from jax.experimental.pallas import tpu as pltpu  # noqa: F401  (imported for TPU backend availability)


def _attn_eval_kernel(q_ref, f_ref, v_ref, mw_ref, w_ref, b_ref, wo_ref, bo_ref, o_ref):
    # Static shapes:
    #   q_ref : (B*Q, P)   zero-padded query, batch folded into rows
    #   f_ref : (B*F, P)   zero-padded features, batch folded into rows
    #   v_ref : (B, F, P)  values, zero-padded to P columns
    #   mw_ref: (B, 1, F)  attention_mask * feature_time_weights (premultiplied)
    #   w_ref : (5, P, P)  packed weights [wq1, wq2, wf1, wf2, wc1] (zero-padded)
    #   b_ref : (5, 1, P)  packed biases  [bq1, bq2, bf1, bf2, bc1] (zero-padded)
    #   wo_ref: (P, OW)    final cls weight, padded to lane-dense OW (multiple of 128)
    #   bo_ref: (1, OW)
    #   o_ref : (B*Q, OW)
    B, F, _ = v_ref.shape
    Q = q_ref.shape[0] // B

    # ---- query mapper: Linear -> Linear (batch folded into rows) ----
    iq = jnp.dot(q_ref[...], w_ref[0], preferred_element_type=jnp.float32) + b_ref[0]
    iq = jnp.dot(iq, w_ref[1], preferred_element_type=jnp.float32) + b_ref[1]        # (B*Q, P)

    # ---- feature mapper: Linear -> Linear ----
    itf = jnp.dot(f_ref[...], w_ref[2], preferred_element_type=jnp.float32) + b_ref[2]
    itf = jnp.dot(itf, w_ref[3], preferred_element_type=jnp.float32) + b_ref[3]      # (B*F, P)

    # ---- sigmoid cross-attention + masked pooling (unrolled over the tiny batch) ----
    pooled_chunks = []
    for b in range(B):
        iq_b = iq[b * Q:(b + 1) * Q]        # (Q, P)   static, 8-sublane aligned slices
        itf_b = itf[b * F:(b + 1) * F]      # (F, P)
        # logits[q, f] = <input_query[q], input_features[f]>  (zero-padded cols add 0)
        logits = jax.lax.dot_general(iq_b, itf_b, (((1,), (1,)), ((), ())),
                                     preferred_element_type=jnp.float32)             # (Q, F)
        w = jax.nn.sigmoid(logits) * mw_ref[b]                                        # (Q, F)
        pooled_chunks.append(jnp.dot(w, v_ref[b], preferred_element_type=jnp.float32))
    pooled = jnp.concatenate(pooled_chunks, axis=0) if B > 1 else pooled_chunks[0]    # (B*Q, P)

    # ---- cls head: Linear -> ReLU -> (Dropout = identity in eval) -> Linear ----
    h = jnp.maximum(jnp.dot(pooled, w_ref[4], preferred_element_type=jnp.float32) + b_ref[4], 0.0)
    out = jnp.dot(h, wo_ref[...], preferred_element_type=jnp.float32) + bo_ref[...]  # (B*Q, OW)
    o_ref[...] = out.astype(o_ref.dtype)


def attention_evaluator_forward(query, features, values,
                                attention_mask, feature_time_weights, params):
    # TODO(synk): transformer-encoder branch (num_transformer_blks > 0) not implemented;
    #             this config uses num_transformer_blks = 0 (self.transformers is None).
    B, Q, QS = query.shape
    _, F, FS = features.shape
    E = values.shape[-1]
    (wq1, bq1), (wq2, bq2) = params["query_mapper"]
    (wf1, bf1), (wf2, bf2) = params["feature_mapper"]
    (wc1, bc1), (wc2, bc2) = params["cls"]
    NL = wc2.shape[1]

    # One padded inner width P for every hidden/intermediate dim, and a lane-dense
    # output width OW (multiple of 128) so the single output store is unmasked.
    P = int(max(QS, FS, E, wq1.shape[1], wq2.shape[1], wf1.shape[1], wf2.shape[1], wc1.shape[1]))
    OW = max(128, ((NL + 127) // 128) * 128)

    f32 = jnp.float32

    def pad2(a, rows, cols):
        a = a.astype(f32)
        return jnp.pad(a, ((0, rows - a.shape[0]), (0, cols - a.shape[1])))

    # Fold batch into matmul rows; zero-pad feature dims to P.
    q2 = pad2(query.reshape(B * Q, QS), B * Q, P)                      # (B*Q, P)
    f2 = pad2(features.reshape(B * F, FS), B * F, P)                   # (B*F, P)
    v3 = jnp.pad(values.astype(f32), ((0, 0), (0, 0), (0, P - E)))     # (B, F, P)
    # Pre-multiplied mask * time-weights -> single input.
    mw = (attention_mask.astype(f32) * feature_time_weights.astype(f32)).reshape(B, 1, F)

    # Pack params into two slabs + a lane-dense final layer (zero padding keeps math exact).
    w_slab = jnp.stack([pad2(w, P, P) for w in (wq1, wq2, wf1, wf2, wc1)])   # (5, P, P)
    b_slab = jnp.stack([pad2(b, 1, P) for b in (bq1, bq2, bf1, bf2, bc1)])   # (5, 1, P)
    wo = pad2(wc2, P, OW)                                                    # (P, OW)
    bo = pad2(bc2, 1, OW)                                                    # (1, OW)

    out = pl.pallas_call(
        _attn_eval_kernel,
        out_shape=jax.ShapeDtypeStruct((B * Q, OW), f32),
        # No grid / BlockSpecs: whole-array VMEM refs, single invocation.
    )(q2, f2, v3, mw, w_slab, b_slab, wo, bo)

    return out[:, :NL].reshape(B, Q, NL)


def _linear_init(key, fan_in, fan_out):
    """Deterministic torch-nn.Linear-style init; weight stored as (in, out)."""
    kw, kb = jax.random.split(key)
    bound = 1.0 / np.sqrt(fan_in)
    w = jax.random.uniform(kw, (fan_in, fan_out), jnp.float32, -bound, bound)
    b = jax.random.uniform(kb, (1, fan_out), jnp.float32, -bound, bound)
    return w, b


def init_params(key, qs, qh, fs, fh, E, ch, nl):
    k = jax.random.split(key, 6)
    return {
        "query_mapper":   [_linear_init(k[0], qs, qh), _linear_init(k[1], qh, E)],
        "feature_mapper": [_linear_init(k[2], fs, fh), _linear_init(k[3], fh, E)],
        "cls":            [_linear_init(k[4], E, ch),  _linear_init(k[5], ch, nl)],
    }


def reference_forward(query, features, values, attention_mask, feature_time_weights, params):
    """Pure-JAX reference mirroring the PyTorch forward (num_transformer_blks=0, eval mode)."""
    (wq1, bq1), (wq2, bq2) = params["query_mapper"]
    (wf1, bf1), (wf2, bf2) = params["feature_mapper"]
    (wc1, bc1), (wc2, bc2) = params["cls"]
    iq = query @ wq1 + bq1
    iq = iq @ wq2 + bq2                                   # (B, Q, E)
    itf = features @ wf1 + bf1
    itf = itf @ wf2 + bf2                                 # (B, F, E)
    attn = jax.nn.sigmoid(jnp.einsum("bqe,bfe->bqf", iq, itf))
    w = attn * feature_time_weights[:, None, :] * attention_mask[:, None, :]
    pooled = jnp.einsum("bqf,bfe->bqe", w, values)
    h = jnp.maximum(pooled @ wc1 + bc1, 0.0)
    return h @ wc2 + bc2


if __name__ == "__main__":
    B, Q, F = 2, 8, 16
    QS, QH = 16, 32
    FS, FH = 16, 32
    E = 32           # embed_size == value_size
    CH, NL = 32, 4

    key = jax.random.PRNGKey(0)
    kq, kf, kv, km, kt, kp = jax.random.split(key, 6)

    query = jax.random.normal(kq, (B, Q, QS), jnp.float32)
    features = jax.random.normal(kf, (B, F, FS), jnp.float32)
    values = jax.random.normal(kv, (B, F, E), jnp.float32)
    attention_mask = (jax.random.uniform(km, (B, F)) > 0.3).astype(jnp.float32)
    feature_time_weights = jax.random.uniform(kt, (B, F), jnp.float32, 0.5, 1.5)

    params = init_params(kp, QS, QH, FS, FH, E, CH, NL)

    out = attention_evaluator_forward(query, features, values,
                                      attention_mask, feature_time_weights, params)
    out = jax.block_until_ready(out)

    ref = reference_forward(query, features, values,
                            attention_mask, feature_time_weights, params)
    assert out.shape == (B, Q, NL)
    np.testing.assert_allclose(np.asarray(out), np.asarray(ref), rtol=1e-5, atol=1e-5)

    print("KERNEL_OK")
</pallas_src>

<mosaic_0001>
module attributes {stable_mosaic.version = 11 : i64} {
  func.func @_attn_eval_kernel(%arg0: memref<16x32xf32, #tpu.memory_space<vmem>>, %arg1: memref<32x32xf32, #tpu.memory_space<vmem>>, %arg2: memref<2x16x32xf32, #tpu.memory_space<vmem>>, %arg3: memref<2x1x16xf32, #tpu.memory_space<vmem>>, %arg4: memref<5x32x32xf32, #tpu.memory_space<vmem>>, %arg5: memref<5x1x32xf32, #tpu.memory_space<vmem>>, %arg6: memref<32x128xf32, #tpu.memory_space<vmem>>, %arg7: memref<1x128xf32, #tpu.memory_space<vmem>>, %arg8: memref<16x128xf32, #tpu.memory_space<vmem>>) attributes {dimension_semantics = [], scalar_prefetch = 0 : i64, scratch_operands = 0 : i64, tpu.core_type = #tpu.core_type<tc>} {
    %c0 = arith.constant 0 : index
    %c0_0 = arith.constant 0 : index
    %0 = vector.load %arg0[%c0, %c0_0] : memref<16x32xf32, #tpu.memory_space<vmem>>, vector<16x32xf32>
    %c0_1 = arith.constant 0 : index
    %c0_2 = arith.constant 0 : index
    %c0_3 = arith.constant 0 : index
    %1 = vector.load %arg4[%c0_1, %c0_2, %c0_3] : memref<5x32x32xf32, #tpu.memory_space<vmem>>, vector<1x32x32xf32>
    %2 = vector.shape_cast %1 : vector<1x32x32xf32> to vector<32x32xf32>
    %cst = arith.constant dense<0.000000e+00> : vector<16x32xf32>
    %3 = tpu.matmul %0, %2, %cst {dimension_numbers = #tpu.dot_dimension_numbers<[1], [0], [0], [1], [0, 0, 1, 1], [], []>} : vector<16x32xf32>, vector<32x32xf32>, vector<16x32xf32> -> vector<16x32xf32>
    %c0_4 = arith.constant 0 : index
    %c0_5 = arith.constant 0 : index
    %c0_6 = arith.constant 0 : index
    %4 = vector.load %arg5[%c0_4, %c0_5, %c0_6] : memref<5x1x32xf32, #tpu.memory_space<vmem>>, vector<1x1x32xf32>
    %5 = vector.shape_cast %4 : vector<1x1x32xf32> to vector<1x32xf32>
    %6 = vector.broadcast %5 : vector<1x32xf32> to vector<16x32xf32>
    %7 = arith.addf %3, %6 : vector<16x32xf32>
    %c1 = arith.constant 1 : index
    %c0_7 = arith.constant 0 : index
    %c0_8 = arith.constant 0 : index
    %8 = vector.load %arg4[%c1, %c0_7, %c0_8] : memref<5x32x32xf32, #tpu.memory_space<vmem>>, vector<1x32x32xf32>
    %9 = vector.shape_cast %8 : vector<1x32x32xf32> to vector<32x32xf32>
    %cst_9 = arith.constant dense<0.000000e+00> : vector<16x32xf32>
    %10 = tpu.matmul %7, %9, %cst_9 {dimension_numbers = #tpu.dot_dimension_numbers<[1], [0], [0], [1], [0, 0, 1, 1], [], []>} : vector<16x32xf32>, vector<32x32xf32>, vector<16x32xf32> -> vector<16x32xf32>
    %c1_10 = arith.constant 1 : index
    %c0_11 = arith.constant 0 : index
    %c0_12 = arith.constant 0 : index
    %11 = vector.load %arg5[%c1_10, %c0_11, %c0_12] : memref<5x1x32xf32, #tpu.memory_space<vmem>>, vector<1x1x32xf32>
    %12 = vector.shape_cast %11 : vector<1x1x32xf32> to vector<1x32xf32>
    %13 = vector.broadcast %12 : vector<1x32xf32> to vector<16x32xf32>
    %14 = arith.addf %10, %13 : vector<16x32xf32>
    %c0_13 = arith.constant 0 : index
    %c0_14 = arith.constant 0 : index
    %15 = vector.load %arg1[%c0_13, %c0_14] : memref<32x32xf32, #tpu.memory_space<vmem>>, vector<32x32xf32>
    %c2 = arith.constant 2 : index
    %c0_15 = arith.constant 0 : index
    %c0_16 = arith.constant 0 : index
    %16 = vector.load %arg4[%c2, %c0_15, %c0_16] : memref<5x32x32xf32, #tpu.memory_space<vmem>>, vector<1x32x32xf32>
    %17 = vector.shape_cast %16 : vector<1x32x32xf32> to vector<32x32xf32>
    %cst_17 = arith.constant dense<0.000000e+00> : vector<32x32xf32>
    %18 = tpu.matmul %15, %17, %cst_17 {dimension_numbers = #tpu.dot_dimension_numbers<[1], [0], [0], [1], [0, 0, 1, 1], [], []>} : vector<32x32xf32>, vector<32x32xf32>, vector<32x32xf32> -> vector<32x32xf32>
    %c2_18 = arith.constant 2 : index
    %c0_19 = arith.constant 0 : index
    %c0_20 = arith.constant 0 : index
    %19 = vector.load %arg5[%c2_18, %c0_19, %c0_20] : memref<5x1x32xf32, #tpu.memory_space<vmem>>, vector<1x1x32xf32>
    %20 = vector.shape_cast %19 : vector<1x1x32xf32> to vector<1x32xf32>
    %21 = vector.broadcast %20 : vector<1x32xf32> to vector<32x32xf32>
    %22 = arith.addf %18, %21 : vector<32x32xf32>
    %c3 = arith.constant 3 : index
    %c0_21 = arith.constant 0 : index
    %c0_22 = arith.constant 0 : index
    %23 = vector.load %arg4[%c3, %c0_21, %c0_22] : memref<5x32x32xf32, #tpu.memory_space<vmem>>, vector<1x32x32xf32>
    %24 = vector.shape_cast %23 : vector<1x32x32xf32> to vector<32x32xf32>
    %cst_23 = arith.constant dense<0.000000e+00> : vector<32x32xf32>
    %25 = tpu.matmul %22, %24, %cst_23 {dimension_numbers = #tpu.dot_dimension_numbers<[1], [0], [0], [1], [0, 0, 1, 1], [], []>} : vector<32x32xf32>, vector<32x32xf32>, vector<32x32xf32> -> vector<32x32xf32>
    %c3_24 = arith.constant 3 : index
    %c0_25 = arith.constant 0 : index
    %c0_26 = arith.constant 0 : index
    %26 = vector.load %arg5[%c3_24, %c0_25, %c0_26] : memref<5x1x32xf32, #tpu.memory_space<vmem>>, vector<1x1x32xf32>
    %27 = vector.shape_cast %26 : vector<1x1x32xf32> to vector<1x32xf32>
    %28 = vector.broadcast %27 : vector<1x32xf32> to vector<32x32xf32>
    %29 = arith.addf %25, %28 : vector<32x32xf32>
    %30 = vector.extract_strided_slice %14 {offsets = [0, 0], sizes = [8, 32], strides = [1, 1]} : vector<16x32xf32> to vector<8x32xf32>
    %31 = vector.extract_strided_slice %29 {offsets = [0, 0], sizes = [16, 32], strides = [1, 1]} : vector<32x32xf32> to vector<16x32xf32>
    %cst_27 = arith.constant dense<0.000000e+00> : vector<8x16xf32>
    %32 = tpu.matmul %30, %31, %cst_27 {dimension_numbers = #tpu.dot_dimension_numbers<[1], [1], [0], [0], [0, 0, 1, 0], [], []>} : vector<8x32xf32>, vector<16x32xf32>, vector<8x16xf32> -> vector<8x16xf32>
    %33 = arith.negf %32 : vector<8x16xf32>
    %34 = math.exp %33 : vector<8x16xf32>
    %cst_28 = arith.constant 1.000000e+00 : f32
    %35 = vector.broadcast %cst_28 : f32 to vector<8x16xf32>
    %36 = arith.addf %35, %34 : vector<8x16xf32>
    %37 = arith.divf %35, %36 : vector<8x16xf32>
    %c0_29 = arith.constant 0 : index
    %c0_30 = arith.constant 0 : index
    %c0_31 = arith.constant 0 : index
    %38 = vector.load %arg3[%c0_29, %c0_30, %c0_31] : memref<2x1x16xf32, #tpu.memory_space<vmem>>, vector<1x1x16xf32>
    %39 = vector.shape_cast %38 : vector<1x1x16xf32> to vector<1x16xf32>
    %40 = vector.broadcast %39 : vector<1x16xf32> to vector<8x16xf32>
    %41 = arith.mulf %37, %40 : vector<8x16xf32>
    %c0_32 = arith.constant 0 : index
    %c0_33 = arith.constant 0 : index
    %c0_34 = arith.constant 0 : index
    %42 = vector.load %arg2[%c0_32, %c0_33, %c0_34] : memref<2x16x32xf32, #tpu.memory_space<vmem>>, vector<1x16x32xf32>
    %43 = vector.shape_cast %42 : vector<1x16x32xf32> to vector<16x32xf32>
    %cst_35 = arith.constant dense<0.000000e+00> : vector<8x32xf32>
    %44 = tpu.matmul %41, %43, %cst_35 {dimension_numbers = #tpu.dot_dimension_numbers<[1], [0], [0], [1], [0, 0, 1, 1], [], []>} : vector<8x16xf32>, vector<16x32xf32>, vector<8x32xf32> -> vector<8x32xf32>
    %45 = vector.extract_strided_slice %14 {offsets = [8, 0], sizes = [8, 32], strides = [1, 1]} : vector<16x32xf32> to vector<8x32xf32>
    %46 = vector.extract_strided_slice %29 {offsets = [16, 0], sizes = [16, 32], strides = [1, 1]} : vector<32x32xf32> to vector<16x32xf32>
    %cst_36 = arith.constant dense<0.000000e+00> : vector<8x16xf32>
    %47 = tpu.matmul %45, %46, %cst_36 {dimension_numbers = #tpu.dot_dimension_numbers<[1], [1], [0], [0], [0, 0, 1, 0], [], []>} : vector<8x32xf32>, vector<16x32xf32>, vector<8x16xf32> -> vector<8x16xf32>
    %48 = arith.negf %47 : vector<8x16xf32>
    %49 = math.exp %48 : vector<8x16xf32>
    %cst_37 = arith.constant 1.000000e+00 : f32
    %50 = vector.broadcast %cst_37 : f32 to vector<8x16xf32>
    %51 = arith.addf %50, %49 : vector<8x16xf32>
    %52 = arith.divf %50, %51 : vector<8x16xf32>
    %c1_38 = arith.constant 1 : index
    %c0_39 = arith.constant 0 : index
    %c0_40 = arith.constant 0 : index
    %53 = vector.load %arg3[%c1_38, %c0_39, %c0_40] : memref<2x1x16xf32, #tpu.memory_space<vmem>>, vector<1x1x16xf32>
    %54 = vector.shape_cast %53 : vector<1x1x16xf32> to vector<1x16xf32>
    %55 = vector.broadcast %54 : vector<1x16xf32> to vector<8x16xf32>
    %56 = arith.mulf %52, %55 : vector<8x16xf32>
    %c1_41 = arith.constant 1 : index
    %c0_42 = arith.constant 0 : index
    %c0_43 = arith.constant 0 : index
    %57 = vector.load %arg2[%c1_41, %c0_42, %c0_43] : memref<2x16x32xf32, #tpu.memory_space<vmem>>, vector<1x16x32xf32>
    %58 = vector.shape_cast %57 : vector<1x16x32xf32> to vector<16x32xf32>
    %cst_44 = arith.constant dense<0.000000e+00> : vector<8x32xf32>
    %59 = tpu.matmul %56, %58, %cst_44 {dimension_numbers = #tpu.dot_dimension_numbers<[1], [0], [0], [1], [0, 0, 1, 1], [], []>} : vector<8x16xf32>, vector<16x32xf32>, vector<8x32xf32> -> vector<8x32xf32>
    %60 = tpu.concatenate %44, %59 in 0 : vector<8x32xf32>, vector<8x32xf32> -> vector<16x32xf32>
    %c4 = arith.constant 4 : index
    %c0_45 = arith.constant 0 : index
    %c0_46 = arith.constant 0 : index
    %61 = vector.load %arg4[%c4, %c0_45, %c0_46] : memref<5x32x32xf32, #tpu.memory_space<vmem>>, vector<1x32x32xf32>
    %62 = vector.shape_cast %61 : vector<1x32x32xf32> to vector<32x32xf32>
    %cst_47 = arith.constant dense<0.000000e+00> : vector<16x32xf32>
    %63 = tpu.matmul %60, %62, %cst_47 {dimension_numbers = #tpu.dot_dimension_numbers<[1], [0], [0], [1], [0, 0, 1, 1], [], []>} : vector<16x32xf32>, vector<32x32xf32>, vector<16x32xf32> -> vector<16x32xf32>
    %c4_48 = arith.constant 4 : index
    %c0_49 = arith.constant 0 : index
    %c0_50 = arith.constant 0 : index
    %64 = vector.load %arg5[%c4_48, %c0_49, %c0_50] : memref<5x1x32xf32, #tpu.memory_space<vmem>>, vector<1x1x32xf32>
    %65 = vector.shape_cast %64 : vector<1x1x32xf32> to vector<1x32xf32>
    %66 = vector.broadcast %65 : vector<1x32xf32> to vector<16x32xf32>
    %67 = arith.addf %63, %66 : vector<16x32xf32>
    %cst_51 = arith.constant 0.000000e+00 : f32
    %68 = vector.broadcast %cst_51 : f32 to vector<16x32xf32>
    %69 = arith.maximumf %67, %68 : vector<16x32xf32>
    %c0_52 = arith.constant 0 : index
    %c0_53 = arith.constant 0 : index
    %70 = vector.load %arg6[%c0_52, %c0_53] : memref<32x128xf32, #tpu.memory_space<vmem>>, vector<32x128xf32>
    %cst_54 = arith.constant dense<0.000000e+00> : vector<16x128xf32>
    %71 = tpu.matmul %69, %70, %cst_54 {dimension_numbers = #tpu.dot_dimension_numbers<[1], [0], [0], [1], [0, 0, 1, 1], [], []>} : vector<16x32xf32>, vector<32x128xf32>, vector<16x128xf32> -> vector<16x128xf32>
    %c0_55 = arith.constant 0 : index
    %c0_56 = arith.constant 0 : index
    %72 = vector.load %arg7[%c0_55, %c0_56] : memref<1x128xf32, #tpu.memory_space<vmem>>, vector<1x128xf32>
    %73 = vector.broadcast %72 : vector<1x128xf32> to vector<16x128xf32>
    %74 = arith.addf %71, %73 : vector<16x128xf32>
    %c0_57 = arith.constant 0 : index
    %c0_58 = arith.constant 0 : index
    %75 = vector.load %arg8[%c0_57, %c0_58] : memref<16x128xf32, #tpu.memory_space<vmem>>, vector<16x128xf32>
    tpu.vector_store %arg8[%c0_57, %c0_58], %74 {strides = array<i32>} : memref<16x128xf32, #tpu.memory_space<vmem>>, vector<16x128xf32>,
    return
  }
}

</mosaic_0001>

<bundles_post_ra>
// kernel: tpu_custom_call.1
= control target key start
LH: loop header
LB: loop body
LE: loop exit
PB: predicated region body
PF: predicated region fallthrough
CT: control target
= control target key end

     0   :  { %13 = vsyncpa [#allocation3], 0  ;;  %s1679_s0 = inlined_call_operand.hbm [shape: f32[16,32], index: 0, kind: input, shape index: {}]   ;;  %s1680_s1 = inlined_call_operand.hbm [shape: f32[32,32], index: 1, kind: input, shape index: {}]   ;;  %s1681_s2 = inlined_call_operand.hbm [shape: f32[2,16,32], index: 2, kind: input, shape index: {}]   ;;  %s1682_s3 = inlined_call_operand.vmem [shape: f32[2,1,16], index: 3, kind: input, shape index: {}]   ;;  %s1683_s4 = inlined_call_operand.hbm [shape: f32[5,32,32], index: 4, kind: input, shape index: {}]   ;;  %s1684_s5 = inlined_call_operand.vmem [shape: f32[5,1,32], index: 5, kind: input, shape index: {}]   ;;  %s1685_s6 = inlined_call_operand.hbm [shape: f32[32,128], index: 6, kind: input, shape index: {}]   ;;  %s1686_s7 = inlined_call_operand.vmem [shape: f32[1,128], index: 7, kind: input, shape index: {}]   ;;  %s1687_s8 = inlined_call_operand.hbm [shape: f32[16,128], index: 8, kind: output, shape index: {}]  }
   0x1   :  { %14 = vsyncpa [#allocation6], 0 }
   0x2   :  { %15 = vsyncpa [#allocation9], 0 }
   0x3   :  { %16 = vsyncpa [#allocation4], 0  ;;  %s1471_s27 = smov [#allocation5]   ;;  %s1472_s29 = smov [#allocation8]  }
   0x4   :  { %s34_s28 = sshll.u32 %s1471_s27, 4  ;;  %s60_s30 = sshll.u32 %s1472_s29, 4  ;;  %s35_s28 = int_to_ptr.vmem [resolvable:$true] %s34_s28  ;;  %s1527_s30 = int_to_ptr.vmem [resolvable:$true] %s60_s30 }
   0x5   :  { %s1331_s11 = scalar_lea.hbm %s1680_s1, 512 }
   0x6   :  { %p1332_p0 = scmp.ne.s32.totalorder %s1680_s1, %s1331_s11  ;;  %p1335_p1 = scmp.lt.u32.totalorder %s1331_s11, %s1680_s1 }
   0x8   :  { %p1337_p2 = pnand %p1335_p1, %p1332_p0 }
   0xa   :  { %1340 = shalt.err (!%p1337_p2)
}
   0xb   :  { %s1341_s16 = scalar_lea.vmem %s35_s28, 512  ;;  %p1346_p4 = scmp.lt.s32.totalorder %s35_s28, %s35_s28 }
   0xc   :  { %p1342_p3 = scmp.ne.s32.totalorder %s35_s28, %s1341_s16  ;;  %p1347_p5 = scmp.lt.s32.totalorder %s1341_s16, %s1341_s16 }
   0xe   :  { %p1348_p6 = por %p1347_p5, %p1346_p4 }
  0x10   :  { %p1349_p7 = pnand %p1348_p6, %p1342_p3 }
  0x12   :  { %1352 = shalt.err (!%p1349_p7)
}
  0x13   :  { %s1473_s17 = smov 128   ;;  %s1474_s18 = smov 8  }
  0x14   :  { %40 = dma.hbm_to_vmem [thread:$0]  %s1680_s1, 512, %s35_s28, [#allocation6], %s1473_s17, %s1473_s17, %s1474_s18  }
  0x15   :  { %s1353_s23 = scalar_lea.hbm %s1683_s4, 2560 }
  0x16   :  { %p1354_p8 = scmp.ne.s32.totalorder %s1683_s4, %s1353_s23  ;;  %p1357_p9 = scmp.lt.u32.totalorder %s1353_s23, %s1683_s4 }
  0x18   :  { %p1359_p10 = pnand %p1357_p9, %p1354_p8 }
  0x1a   :  { %1362 = shalt.err (!%p1359_p10)
}
  0x1b   :  { %s1363_s29 = scalar_lea.vmem %s1527_s30, 2560  ;;  %p1368_p12 = scmp.lt.s32.totalorder %s1527_s30, %s1527_s30 }
  0x1c   :  { %p1364_p11 = scmp.ne.s32.totalorder %s1527_s30, %s1363_s29  ;;  %p1369_p13 = scmp.lt.s32.totalorder %s1363_s29, %s1363_s29 }
  0x1e   :  { %p1370_p0 = por %p1369_p13, %p1368_p12 }
  0x20   :  { %p1371_p1 = pnand %p1370_p0, %p1364_p11 }
  0x22   :  { %1374 = shalt.err (!%p1371_p1)
}
  0x23   :  { %66 = dma.hbm_to_vmem [thread:$0]  %s1683_s4, 2560, %s1527_s30, [#allocation9], %s1473_s17, %s1473_s17, %s1474_s18  }
  0x24   :  { %s1475_s9 = smov [#allocation2]   ;;  %s1476_s11 = smov [#allocation7]  }
  0x25   :  { %s22_s10 = sshll.u32 %s1475_s9, 4  ;;  %s46_s12 = sshll.u32 %s1476_s11, 4  ;;  %s23_s10 = int_to_ptr.vmem [resolvable:$true] %s22_s10  ;;  %s1564_s12 = int_to_ptr.vmem [resolvable:$true] %s46_s12 }
  0x26   :  { %s1375_s15 = scalar_lea.hbm %s1679_s0, 256 }
  0x27   :  { %p1376_p2 = scmp.ne.s32.totalorder %s1679_s0, %s1375_s15  ;;  %p1379_p3 = scmp.lt.u32.totalorder %s1375_s15, %s1679_s0 }
  0x29   :  { %p1381_p4 = pnand %p1379_p3, %p1376_p2 }
  0x2b   :  { %1384 = shalt.err (!%p1381_p4)
}
  0x2c   :  { %s1385_s4 = scalar_lea.vmem %s23_s10, 256  ;;  %p1390_p6 = scmp.lt.s32.totalorder %s23_s10, %s23_s10 }
  0x2d   :  { %p1386_p5 = scmp.ne.s32.totalorder %s23_s10, %s1385_s4  ;;  %p1391_p7 = scmp.lt.s32.totalorder %s1385_s4, %s1385_s4 }
  0x2f   :  { %p1392_p8 = por %p1391_p7, %p1390_p6 }
  0x31   :  { %p1393_p9 = pnand %p1392_p8, %p1386_p5 }
  0x33   :  { %1396 = shalt.err (!%p1393_p9)
}
  0x34   :  { %28 = dma.hbm_to_vmem [thread:$0]  %s1679_s0, 256, %s23_s10, [#allocation3], %s1473_s17, %s1473_s17, %s1474_s18  }
  0x35   :  { %s1397_s25 = scalar_lea.hbm %s1681_s2, 512 }
  0x36   :  { %p1398_p10 = scmp.ne.s32.totalorder %s1681_s2, %s1397_s25  ;;  %p1401_p11 = scmp.lt.u32.totalorder %s1397_s25, %s1681_s2 }
  0x38   :  { %p1403_p12 = pnand %p1401_p11, %p1398_p10 }
  0x3a   :  { %1406 = shalt.err (!%p1403_p12)
}
  0x3b   :  { %s1407_s28 = scalar_lea.vmem %s1564_s12, 512  ;;  %p1412_p0 = scmp.lt.s32.totalorder %s1564_s12, %s1564_s12 }
  0x3c   :  { %p1408_p13 = scmp.ne.s32.totalorder %s1564_s12, %s1407_s28  ;;  %p1413_p1 = scmp.lt.s32.totalorder %s1407_s28, %s1407_s28 }
  0x3e   :  { %p1414_p2 = por %p1413_p1, %p1412_p0 }
  0x40   :  { %p1415_p3 = pnand %p1414_p2, %p1408_p13 }
  0x42   :  { %1418 = shalt.err (!%p1415_p3)
}
  0x43   :  { %52 = dma.hbm_to_vmem [thread:$0]  %s1681_s2, 512, %s1564_s12, [#allocation6], %s1473_s17, %s1473_s17, %s1474_s18  }
  0x44   :  { %s1477_s10 = smov [#allocation10]   ;;  %s1419_s15 = scalar_lea.hbm %s1685_s6, 512 }
  0x45   :  { %s74_s11 = sshll.u32 %s1477_s10, 4  ;;  %p1420_p4 = scmp.ne.s32.totalorder %s1685_s6, %s1419_s15  ;;  %s75_s11 = int_to_ptr.vmem [resolvable:$true] %s74_s11 }
  0x46   :  { %p1423_p5 = scmp.lt.u32.totalorder %s1419_s15, %s1685_s6 }
  0x48   :  { %p1425_p6 = pnand %p1423_p5, %p1420_p4 }
  0x4a   :  { %1428 = shalt.err (!%p1425_p6)
}
  0x4b   :  { %s1429_s4 = scalar_lea.vmem %s75_s11, 512  ;;  %p1434_p8 = scmp.lt.s32.totalorder %s75_s11, %s75_s11 }
  0x4c   :  { %p1430_p7 = scmp.ne.s32.totalorder %s75_s11, %s1429_s4  ;;  %p1435_p9 = scmp.lt.s32.totalorder %s1429_s4, %s1429_s4 }
  0x4e   :  { %p1436_p10 = por %p1435_p9, %p1434_p8 }
  0x50   :  { %p1437_p11 = pnand %p1436_p10, %p1430_p7 }
  0x52   :  { %1440 = shalt.err (!%p1437_p11)
}
  0x53   :  { %80 = dma.hbm_to_vmem [thread:$0]  %s1685_s6, 512, %s75_s11, [#allocation9], %s1473_s17, %s1473_s17, %s1474_s18  }
  0x54   :  { %1463 = dma.done.wait [#allocation3], 256  }
  0x55   :  { %1464 = vsyncadd [#allocation3], 4294967040 }
  0x56   :  { %1465 = dma.done.wait [#allocation6], 1024  }
  0x57   :  { %1466 = vsyncadd [#allocation6], 4294966272 }
  0x58   :  { %1467 = dma.done.wait [#allocation9], 3072  }
  0x59   :  { %1468 = vsyncadd [#allocation9], 4294964224  ;;  %vm111_vm0 = vcmask 261120   ;;  %v100_v0 = vld [vmem:[#allocation8] sm:$0xff]  ;;  %v101_v1 = vld [vmem:[#allocation8 + $0x8] sm:$0xff]  ;;  %v1478_v44 = vmov 0.0|0.0  }
  0x5a   :  { %v102_v2 = vld [vmem:[#allocation8 + $0x10] sm:$0xff]  ;;  %v1250_v3 = vpack.c.bf16 %v101_v1, %v100_v0  ;;  %v103_v4 = vld [vmem:[#allocation8 + $0x18] sm:$0xff]  ;;  %v292_v7 = vld [vmem:[#allocation8 + $0x40] sm:$0xff]  ;;  %vm1479_vm1 = vmmov 0   ;;  %v1480_v45 = vmov 0.0   ;;  %vm606_vm3 = vcmask 130048  }
  0x5b   :  { %v98_v5 = vld [vmem:[#allocation2] sm:$0xff]  ;;  %v1254_v6 = vpack.c.bf16 %v103_v4, %v102_v2  ;;  %v293_v8 = vld [vmem:[#allocation8 + $0x48] sm:$0xff]  ;;  %v194_v9 = vld [vmem:[#allocation8 + $0x20] sm:$0xff]  ;;  %s1481_s13 = smov [#allocation11]  }
  0x5c   :  { %1158 = vmatprep.mubr.msk.f32.mxu0 %vm111_vm0, %v98_v5  ;;  %1251 = vmatprep.subr.bf16.mxu0 %v1250_v3  ;;  %v1266_v10 = vpack.c.bf16 %v293_v8, %v292_v7  ;;  %v195_v11 = vld [vmem:[#allocation8 + $0x28] sm:$0xff]  ;;  %v294_v12 = vld [vmem:[#allocation8 + $0x50] sm:$0xff]  ;;  %v295_v13 = vld [vmem:[#allocation8 + $0x58] sm:$0xff]  ;;  %s1045_s14 = sshll.u32 %s1481_s13, 4  ;;  %s1046_s14 = int_to_ptr.vmem [resolvable:$true] %s1045_s14 }
  0x5d   :  { %1253 = vmatpush3.bf16.msra.mxu0 %v1250_v3  ;;  %v1258_v14 = vpack.c.bf16 %v195_v11, %v194_v9  ;;  %v99_v15 = vld [vmem:[#allocation2 + $0x8] sm:$0xff]  ;;  %v1270_v16 = vpack.c.bf16 %v295_v13, %v294_v12  ;;  %v287_v17 = vld [vmem:[#allocation5] sm:$0xff]  ;;  %v288_v18 = vld [vmem:[#allocation5 + $0x8] sm:$0xff]  ;;  %p1446_p13 = scmp.lt.s32.totalorder %s1046_s14, %s1046_s14 }
  0x5e   :  { %1255 = vmatprep.subr.bf16.mxu0 %v1254_v6  ;;  %v289_v19 = vld [vmem:[#allocation5 + $0x10] sm:$0xff]  ;;  %v290_v20 = vld [vmem:[#allocation5 + $0x18] sm:$0xff]  ;;  %v402_v24 = vld [vmem:[#allocation8 + $0x60] sm:$0xff] }
  0x5f   :  { %1259 = vmatprep.subr.bf16.mxu1 %v1258_v14  ;;  %v196_v21 = vld [vmem:[#allocation8 + $0x30] sm:$0xff]  ;;  %v197_v22 = vld [vmem:[#allocation8 + $0x38] sm:$0xff]  ;;  %v403_v25 = vld [vmem:[#allocation8 + $0x68] sm:$0xff] }
  0x60   :  { %1261 = vmatpush3.bf16.msra.mxu1 %v1258_v14  ;;  %v1262_v23 = vpack.c.bf16 %v197_v22, %v196_v21  ;;  %v1274_v26 = vpack.c.bf16 %v403_v25, %v402_v24  ;;  %v1059_v27 = vld [vmem:[%s1684_s5] ss:$0 sm:$0xff]  ;;  %v405_v30 = vld [vmem:[#allocation8 + $0x78] sm:$0xff]  ;;  %v1067_v35 = vld [vmem:[%s1684_s5 + $0x2] ss:$0 sm:$0xff] }
  0x61   :  { %1257 = vmatpush3.bf16.msra.mxu0 %v1254_v6  ;;  %v404_v29 = vld [vmem:[#allocation8 + $0x70] sm:$0xff]  ;;  %vm1284_vm2 = vmpackc.low %vm111_vm0, %vm111_vm0  ;;  %v604_v62 = vld [vmem:[#allocation7] sm:$0xff] }
  0x62   :  { %1267 = vmatprep.subr.bf16.mxu0 %v1266_v10  ;;  %1263 = vmatprep.subr.bf16.mxu1 %v1262_v23  ;;  %v1278_v34 = vpack.c.bf16 %v405_v30, %v404_v29  ;;  %v1073_v48 = vld [vmem:[%s1684_s5 + $0x3] ss:$0 sm:$0xff]  ;;  %v1063_v58 = vld [vmem:[%s1684_s5 + $0x1] ss:$0 sm:$0xff]  ;;  %v605_v63 = vld [vmem:[#allocation7 + $0x8] sm:$0xff] }
  0x63   :  { %v1287_v0 = vpack.c.bf16 %v605_v63, %v604_v62  ;;  %v775_v11 = vld [vmem:[#allocation7 + $0x10] sm:$0xff]  ;;  %v776_v12 = vld [vmem:[#allocation7 + $0x18] sm:$0xff]  ;;  %v852_v21 = vld [vmem:[#allocation8 + $0x88] sm:$0xff] }
  0x64   :  { %1159 = vmatmul.mubr.msk.f32.vlgmr.msra.gmra.mrb[0].mxu0 %vm111_vm0, %v99_v15  ;;  %1265 = vmatpush3.bf16.msra.mxu1 %v1262_v23  ;;  %v1082_v13 = vld [vmem:[%s1682_s3] ss:$0 sm:$0xff]  ;;  %v1294_v15 = vpack.c.bf16 %v776_v12, %v775_v11  ;;  %v854_v24 = vld [vmem:[#allocation8 + $0x98] sm:$0xff] }
  0x65   :  { %1269 = vmatpush3.bf16.msra.mxu0 %v1266_v10  ;;  %1180 = vmatprep.mubr.msk.f32.mxu0 %vm111_vm0, %v287_v17  ;;  %v1089_v17 = vld [vmem:[%s1682_s3 + $0x1] ss:$0 sm:$0xff] }
  0x66   :  { %1271 = vmatprep.subr.bf16.mxu0 %v1270_v16  ;;  %1275 = vmatprep.subr.bf16.mxu1 %v1274_v26  ;;  %v853_v23 = vld [vmem:[#allocation8 + $0x90] sm:$0xff] }
  0x67   :  { %v1300_v25 = vpack.c.bf16 %v854_v24, %v853_v23 }
  0x69   :  { %1273 = vmatpush3.bf16.msra.mxu0 %v1270_v16 }
  0x6a   :  { %1282 = vmatprep.subr.bf16.mxu0 %v1478_v44 }
  0x6c   :  { %1181 = vmatmul.mubr.msk.f32.vlgmr.msra.gmra.mrb[2].mxu0 %vm111_vm0, %v288_v18 }
  0x6d   :  { %1183 = vmatprep.mubr.msk.f32.mxu0 %vm111_vm0, %v289_v19 }
  0x70   :  { %1184 = vmatmul.mubr.msk.f32.gmra.mrb[4].mxu0 %vm111_vm0, %v290_v20  ;;  %v851_v20 = vld [vmem:[#allocation8 + $0x80] sm:$0xff] }
  0x71   :  { %1204 = vmatprep.mubr.msk.f32.mxu0 %vm1479_vm1, %v1480_v45  ;;  %v1296_v22 = vpack.c.bf16 %v852_v21, %v851_v20 }
 0x137   :  { %v1160_v28 = vpop.f32.mrb[0].mxu0 }
 0x138   :  { %v190_v31 = vadd.f32 %v1160_v28, %v1059_v27  ;;  %v184_v32 = vpop.f32.mrb[1].mxu0 }
 0x139   :  { %v185_v33 = vadd.f32 %v1059_v27, %v184_v32  ;;  %v947_v27 = vld [vmem:[#allocation10 + $0x8] sm:$0xff] }
 0x13b   :  { %1169 = vmatprep.mubr.msk.f32.mxu1 %vm111_vm0, %v185_v33  ;;  %v948_v33 = vld [vmem:[#allocation10 + $0x10] sm:$0xff] }
 0x13c   :  { %1170 = vmatmul.mubr.msk.f32.vlgmr.msra.gmra.mrb[0].mxu1 %vm111_vm0, %v190_v31 }
 0x13d   :  { %1277 = vmatpush3.bf16.msra.mxu1 %v1274_v26  ;;  %v946_v26 = vld [vmem:[#allocation10] sm:$0xff] }
 0x13e   :  { %1279 = vmatprep.subr.bf16.mxu1 %v1278_v34  ;;  %v1304_v28 = vpack.c.bf16 %v947_v27, %v946_v26 }
 0x13f   :  { %v1182_v36 = vpop.f32.mrb[2].mxu0 }
 0x140   :  { %v382_v37 = vpop.f32.mrb[3].mxu0  ;;  %v388_v39 = vadd.f32 %v1182_v36, %v1067_v35  ;;  %v1092_v36 = vld [vmem:[%s1684_s5 + $0x4] ss:$0 sm:$0xff]  ;;  %s1441_s5 = scalar_lea.vmem %s1046_s14, 256 }
 0x141   :  { %v383_v38 = vadd.f32 %v1067_v35, %v382_v37  ;;  %1281 = vmatpush3.bf16.msra.mxu1 %v1278_v34  ;;  %v949_v34 = vld [vmem:[#allocation10 + $0x18] sm:$0xff]  ;;  %p1442_p12 = scmp.ne.s32.totalorder %s1046_s14, %s1441_s5  ;;  %p1447_p0 = scmp.lt.s32.totalorder %s1441_s5, %s1441_s5 }
 0x142   :  { %1286 = vmatprep.subr.bf16.mxu1 %v1478_v44 }
 0x143   :  { %1194 = vmatprep.mubr.msk.f32.mxu1 %vm111_vm0, %v383_v38  ;;  %v1185_v40 = vpop.f32.mrb[4].mxu0  ;;  %p1448_p1 = por %p1447_p0, %p1446_p13 }
 0x144   :  { %v398_v41 = vadd.f32 %v1185_v40, %v1067_v35  ;;  %1195 = vmatmul.mubr.msk.f32.vlgmr.msra.gmra.mrb[2].mxu1 %vm111_vm0, %v388_v39  ;;  %v392_v42 = vpop.f32.mrb[5].mxu0 }
 0x145   :  { %v393_v43 = vadd.f32 %v1067_v35, %v392_v42  ;;  %1288 = vmatpush3.bf16.msra.mxu1 %v1287_v0  ;;  %v1308_v35 = vpack.c.bf16 %v949_v34, %v948_v33  ;;  %p1449_p2 = pnand %p1448_p1, %p1442_p12 }
 0x146   :  { %1293 = vmatprep.subr.bf16.mxu1 %v1478_v44 }
 0x147   :  { %1197 = vmatprep.mubr.msk.f32.mxu1 %vm111_vm0, %v393_v43  ;;  %v1095_v43 = vld [vmem:[%s1686_s7] ss:$0 sm:$0xff] }
 0x148   :  { %1198 = vmatmul.mubr.msk.f32.gmra.mrb[4].mxu1 %vm111_vm0, %v398_v41 }
 0x149   :  { %1211 = vmatprep.mubr.msk.f32.mxu1 %vm1479_vm1, %v1480_v45 }
 0x20f   :  { %v1171_v46 = vpop.f32.mrb[0].mxu1 }
 0x210   :  { %v278_v47 = vpop.f32.mrb[1].mxu1  ;;  %v284_v61 = vadd.f32 %v1171_v46, %v1063_v58 }
 0x211   :  { %v279_v60 = vadd.f32 %v1063_v58, %v278_v47 }
 0x217   :  { %v1196_v49 = vpop.f32.mrb[2].mxu1 }
 0x218   :  { %v498_v50 = vadd.f32 %v1196_v49, %v1073_v48  ;;  %v492_v51 = vpop.f32.mrb[3].mxu1 }
 0x219   :  { %v493_v52 = vadd.f32 %v1073_v48, %v492_v51 }
 0x21b   :  { %v1283_v53 = vpack.c.bf16 %v498_v50, %v493_v52  ;;  %v1199_v54 = vpop.f32.mrb[4].mxu1 }
 0x21c   :  { %v508_v55 = vadd.f32 %v1199_v54, %v1073_v48  ;;  %v502_v56 = vpop.f32.mrb[5].mxu1 }
 0x21d   :  { %v503_v57 = vadd.f32 %v1073_v48, %v502_v56  ;;  %1285 = vmatpush3.bf16.xpose.msk.msra.mxu0 %vm1284_vm2, %v1283_v53 }
 0x21e   :  { %1289 = vmatprep.subr.bf16.mxu0 %v1478_v44 }
 0x21f   :  { %v1290_v59 = vpack.c.bf16 %v508_v55, %v503_v57 }
 0x224   :  { %1205 = vmatmul.mubr.msk.f32.vlgmr.msra.gmra.mrb[6].mxu0 %vm111_vm0, %v279_v60 }
 0x225   :  { %1292 = vmatpush3.bf16.xpose.msk.msra.mxu0 %vm1284_vm2, %v1290_v59  ;;  %1218 = vmatprep.mubr.msk.f32.mxu0 %vm1479_vm1, %v1480_v45 }
 0x226   :  { %1305 = vmatprep.subr.bf16.mxu0 %v1304_v28 }
 0x22c   :  { %1219 = vmatmul.mubr.msk.f32.vlgmr.msra.gmra.mrb[8].mxu0 %vm111_vm0, %v284_v61 }
 0x22d   :  { %1307 = vmatpush3.bf16.msra.mxu0 %v1304_v28 }
 0x22e   :  { %1309 = vmatprep.subr.bf16.mxu0 %v1308_v35 }
 0x231   :  { %1311 = vmatpush3.bf16.msra.mxu0 %v1308_v35 }
 0x2f7   :  { %v586_v1 = vpop.f32.mrb[6].mxu0 }
 0x2f8   :  { %v1081_v2 = vmul.f32 -1.442695, %v586_v1  ;;  %v1206_v3 = vpop.f32.mrb[7].mxu0 }
 0x2fa   :  { %1323 = vpow2.f32 %v1081_v2 }
 0x2ff   :  { %v755_v4 = vpop.f32.mrb[8].mxu0 }
 0x300   :  { %v1087_v5 = vmul.f32 -1.442695, %v755_v4  ;;  %v1220_v6 = vpop.f32.mrb[9].mxu0 }
 0x302   :  { %1325 = vpow2.f32 %v1087_v5 }
 0x304   :  { %v1324_v7 = vpop.eup %1323 }
 0x305   :  { %v593_v8 = vadd.f32 1.0, %v1324_v7 }
 0x307   :  { %1327 = vrcp.f32 %v593_v8 }
 0x30c   :  { %v1326_v9 = vpop.eup %1325 }
 0x30d   :  { %v762_v10 = vadd.f32 1.0, %v1326_v9 }
 0x30f   :  { %1329 = vrcp.f32 %v762_v10 }
 0x311   :  { %v1328_v14 = vpop.eup %1327 }
 0x312   :  { %v603_v16 = vmul.f32 %v1328_v14, %v1082_v13 }
 0x314   :  { %1212 = vmatmul.mubr.msk.f32.vlgmr.msra.gmra.mrb[6].mxu1 %vm606_vm3, %v603_v16 }
 0x315   :  { %1295 = vmatpush3.bf16.msra.mxu1 %v1294_v15  ;;  %1225 = vmatprep.mubr.msk.f32.mxu1 %vm1479_vm1, %v1480_v45 }
 0x316   :  { %1297 = vmatprep.subr.bf16.mxu1 %v1296_v22 }
 0x319   :  { %v1330_v18 = vpop.eup %1329 }
 0x31a   :  { %v773_v19 = vmul.f32 %v1330_v18, %v1089_v17 }
 0x31c   :  { %1226 = vmatmul.mubr.msk.f32.vlgmr.msra.gmra.mrb[8].mxu1 %vm606_vm3, %v773_v19 }
 0x31d   :  { %1299 = vmatpush3.bf16.msra.mxu1 %v1296_v22 }
 0x31e   :  { %1301 = vmatprep.subr.bf16.mxu1 %v1300_v25 }
 0x321   :  { %1303 = vmatpush3.bf16.msra.mxu1 %v1300_v25 }
 0x3e7   :  { %v676_v29 = vpop.f32.mrb[6].mxu1 }
 0x3e8   :  { %v1213_v30 = vpop.f32.mrb[7].mxu1  ;;  %1236 = vmatprep.mubr.msk.f32.mxu1 %vm111_vm0, %v676_v29 }
 0x3ef   :  { %v846_v31 = vpop.f32.mrb[8].mxu1 }
 0x3f0   :  { %v1227_v32 = vpop.f32.mrb[9].mxu1  ;;  %1237 = vmatmul.mubr.msk.f32.vlgmr.msra.gmra.mrb[10].mxu1 %vm111_vm0, %v846_v31 }
 0x4c3   :  { %v1238_v37 = vpop.f32.mrb[10].mxu1 }
 0x4c4   :  { %v941_v38 = vadd.f32 %v1238_v37, %v1092_v36  ;;  %v935_v39 = vpop.f32.mrb[11].mxu1 }
 0x4c5   :  { %v936_v40 = vadd.f32 %v1092_v36, %v935_v39 }
 0x4c6   :  { %v945_v42 = vmax.f32 %v941_v38, 0.0 }
 0x4c7   :  { %v944_v41 = vmax.f32 %v936_v40, 0.0 }
 0x4c9   :  { %1247 = vmatprep.mubr.msk.f32.mxu0 %vm111_vm0, %v944_v41 }
 0x4ca   :  { %1248 = vmatmul.mubr.msk.f32.vlgmr.msra.gmra.mrb[10].mxu0 %vm111_vm0, %v945_v42 }
 0x59d   :  { %v1249_v44 = vpop.f32.mrb[10].mxu0 }
 0x59e   :  { %v1035_v45 = vadd.f32 %v1249_v44, %v1095_v43  ;;  %v1029_v46 = vpop.f32.mrb[11].mxu0 }
 0x59f   :  { %v1030_v47 = vadd.f32 %v1095_v43, %v1029_v46 }
 0x5a0   :  { %1039 = vst [vmem:[#allocation11 + $0x8] sm:$0xff] %v1035_v45 }
 0x5a1   :  { %1038 = vst [vmem:[#allocation11] sm:$0xff] %v1030_v47 }
 0x5a2   :  { %1452 = shalt.err (!%p1449_p2)
}
 0x5a3   :  { %s1453_s7 = scalar_lea.hbm %s1687_s8, 256 }
 0x5a4   :  { %p1454_p3 = scmp.ne.s32.totalorder %s1687_s8, %s1453_s7  ;;  %p1457_p4 = scmp.lt.u32.totalorder %s1453_s7, %s1687_s8 }
 0x5a6   :  { %p1459_p5 = pnand %p1457_p4, %p1454_p3 }
 0x5a8   :  { %1462 = shalt.err (!%p1459_p5)
}
 0x5a9   :  { %1051 = dma.vmem_to_hbm [thread:$0]  %s1046_s14, 256, %s1687_s8, [#allocation4], %s1473_s17, %s1473_s17, %s1474_s18  }
 0x5aa   :  { %1469 = dma.done.wait [#allocation4], 256  }
 0x5ab   :  { %1470 = vsyncadd [#allocation4], 4294967040 }
 0x5ac   :  { %1055 = vsyncpa [#allocation3], 1 }
 0x5ad   :  { %1056 = vsyncpa [#allocation6], 1 }
 0x5ae   :  { %1057 = vsyncpa [#allocation9], 1 }
 0x5af   :  { %1058 = vsyncpa [#allocation4], 1 }

</bundles_post_ra>
